<compile_context>
chip_gen: v6e
topology: v6e:2x2x1
jax: 0.10.0
libtpu: 0.0.40
codegen_flags: <defaults>
</compile_context>

<pallas_src>
import functools

import jax
import jax.numpy as jnp
from jax.experimental import pallas as pl
from jax.experimental.pallas import tpu as pltpu


def _round_up(x, m):
    return (x + m - 1) // m * m


def _ffn_kernel(x_ref, w1_ref, b1_ref, w2_ref, b2_ref, o_ref, acc_ref):
    # x_ref:  (tm, d_in)        row tile (compute dtype, e.g. bf16)
    # w1_ref: (d_in, tk_hid)    K-chunk of W1
    # b1_ref: (1, tk_hid)       f32 bias chunk
    # w2_ref: (tk_hid, d_out_p) K-chunk of W2
    # b2_ref: (1, d_out_p)      f32 bias (full)
    # o_ref:  (tm, d_out_p)     output row tile
    # acc_ref:(tm, d_out_p)     f32 accumulator (persists across the k axis)
    k = pl.program_id(1)

    @pl.when(k == 0)
    def _():
        acc_ref[...] = jnp.zeros_like(acc_ref)

    # First matmul: MXU with f32 accumulation, bias + ReLU in f32 on the VPU.
    h = jnp.dot(x_ref[...], w1_ref[...], preferred_element_type=jnp.float32)
    h = jnp.maximum(h + b1_ref[...], 0.0)

    # Second matmul: downcast the activation to the MXU operand dtype,
    # accumulate the partial product over hidden-dim chunks in f32.
    acc_ref[...] += jnp.dot(h.astype(w2_ref.dtype), w2_ref[...],
                            preferred_element_type=jnp.float32)

    @pl.when(k == pl.num_programs(1) - 1)
    def _():
        o_ref[...] = (acc_ref[...] + b2_ref[...]).astype(o_ref.dtype)


@functools.partial(jax.jit, static_argnames=("tm", "tk_hid", "compute_dtype"))
def position_wise_ffn(x, w1, b1, w2, b2, *, tm=256, tk_hid=None,
                      compute_dtype=jnp.bfloat16):
    """x: (batch, seq, d_in). Weights stored as (in, out). Returns (batch, seq, d_out)."""
    batch, seq, d_in = x.shape
    d_hid = w1.shape[1]
    d_out = w2.shape[1]
    out_dtype = x.dtype
    rows = batch * seq

    # --- tiling / padding decisions (all static) -----------------------------
    # Row tile: large for MXU utilization, clamped to the (8-aligned) row count.
    # For real transformer shapes rows >> tm, so the row grid axis keeps both
    # v7x TensorCores busy via dimension_semantics=("parallel", ...).
    tm = int(min(tm, _round_up(rows, 8)))
    rows_p = _round_up(rows, tm)

    # Hidden tile: keep W1/W2 fully resident for small FFNs, stream K-chunks
    # (multiple of 128) for large ones so VMEM stays bounded on v7x (64 MiB).
    if tk_hid is None:
        tk_hid = d_hid if d_hid <= 2048 else 512
    tk_hid = d_hid if tk_hid >= d_hid else _round_up(int(tk_hid), 128)
    d_hid_p = _round_up(d_hid, tk_hid)
    kt = d_hid_p // tk_hid

    # Lane-dense output: pad d_out to a multiple of 128 -> unmasked stores.
    d_out_p = _round_up(d_out, 128)

    # --- pad / cast operands --------------------------------------------------
    x2d = x.reshape(rows, d_in).astype(compute_dtype)
    if rows_p != rows:
        x2d = jnp.pad(x2d, ((0, rows_p - rows), (0, 0)))

    w1p = w1.astype(compute_dtype)
    b1p = b1.astype(jnp.float32).reshape(1, d_hid)
    if d_hid_p != d_hid:
        w1p = jnp.pad(w1p, ((0, 0), (0, d_hid_p - d_hid)))
        b1p = jnp.pad(b1p, ((0, 0), (0, d_hid_p - d_hid)))

    w2p = w2.astype(compute_dtype)
    b2p = b2.astype(jnp.float32).reshape(1, d_out)
    if d_hid_p != d_hid:
        w2p = jnp.pad(w2p, ((0, d_hid_p - d_hid), (0, 0)))
    if d_out_p != d_out:
        w2p = jnp.pad(w2p, ((0, 0), (0, d_out_p - d_out)))
        b2p = jnp.pad(b2p, ((0, 0), (0, d_out_p - d_out)))

    # --- VMEM budget (double-buffered inputs/outputs + f32 accumulator) ------
    cbytes = jnp.dtype(compute_dtype).itemsize
    obytes = jnp.dtype(out_dtype).itemsize
    vmem_est = (2 * (tm * d_in * cbytes            # x tile
                     + d_in * tk_hid * cbytes      # W1 chunk
                     + tk_hid * 4                  # b1 chunk
                     + tk_hid * d_out_p * cbytes   # W2 chunk
                     + d_out_p * 4                 # b2
                     + tm * d_out_p * obytes)      # output tile
                + tm * d_out_p * 4)                # accumulator scratch
    # Cap at 64 MiB so the same config is valid on v7x; floor at 32 MiB.
    vmem_limit = int(min(64 * 1024 * 1024, max(2 * vmem_est, 32 * 1024 * 1024)))

    cost = pl.CostEstimate(
        flops=2 * rows * d_in * d_hid + 2 * rows * d_hid * d_out,
        transcendentals=0,
        bytes_accessed=int(rows * d_in * cbytes
                           + d_in * d_hid * cbytes
                           + d_hid * d_out * cbytes
                           + rows * d_out * obytes),
    )

    out2d = pl.pallas_call(
        _ffn_kernel,
        out_shape=jax.ShapeDtypeStruct((rows_p, d_out_p), out_dtype),
        grid_spec=pltpu.PrefetchScalarGridSpec(
            num_scalar_prefetch=0,
            grid=(rows_p // tm, kt),
            in_specs=[
                pl.BlockSpec((tm, d_in), lambda i, k: (i, 0)),        # x rows
                pl.BlockSpec((d_in, tk_hid), lambda i, k: (0, k)),    # W1 chunk
                pl.BlockSpec((1, tk_hid), lambda i, k: (0, k)),       # b1 chunk
                pl.BlockSpec((tk_hid, d_out_p), lambda i, k: (k, 0)), # W2 chunk
                pl.BlockSpec((1, d_out_p), lambda i, k: (0, 0)),      # b2
            ],
            out_specs=pl.BlockSpec((tm, d_out_p), lambda i, k: (i, 0)),
            scratch_shapes=[pltpu.VMEM((tm, d_out_p), jnp.float32)],
        ),
        compiler_params=pltpu.CompilerParams(
            dimension_semantics=("parallel", "arbitrary"),
            vmem_limit_bytes=vmem_limit,
        ),
        cost_estimate=cost,
    )(x2d, w1p, b1p, w2p, b2p)

    return out2d[:rows, :d_out].reshape(batch, seq, d_out)


def init_params(key, d_in, d_hid, d_out, dtype=jnp.float32):
    """Mirror nn.Linear's uniform(-1/sqrt(fan_in), +) init; weights stored (in, out)."""
    k1, k2, k3, k4 = jax.random.split(key, 4)
    bound1 = 1.0 / (d_in ** 0.5)
    bound2 = 1.0 / (d_hid ** 0.5)
    w1 = jax.random.uniform(k1, (d_in, d_hid), dtype, -bound1, bound1)
    b1 = jax.random.uniform(k2, (d_hid,), dtype, -bound1, bound1)
    w2 = jax.random.uniform(k3, (d_hid, d_out), dtype, -bound2, bound2)
    b2 = jax.random.uniform(k4, (d_out,), dtype, -bound2, bound2)
    return w1, b1, w2, b2


if __name__ == "__main__":
    key = jax.random.PRNGKey(0)
    k_x, k_p = jax.random.split(key)

    batch, seq = 2, 8
    d_in, d_hid, d_out = 32, 64, 32

    x = jax.random.normal(k_x, (batch, seq, d_in), dtype=jnp.float32)
    w1, b1, w2, b2 = init_params(k_p, d_in, d_hid, d_out)

    out = position_wise_ffn(x, w1, b1, w2, b2)
    out = jax.block_until_ready(out)
    assert out.shape == (batch, seq, d_out)

    # Reference 1: exact f32 math (loose tolerance: kernel uses bf16 MXU operands).
    ref_f32 = jnp.maximum(x @ w1 + b1, 0.0) @ w2 + b2
    assert jnp.allclose(out, ref_f32, atol=5e-2, rtol=5e-2)

    # Reference 2: pure-JAX mirror of the kernel's mixed-precision math.
    xb = x.reshape(-1, d_in).astype(jnp.bfloat16)
    h = jnp.dot(xb, w1.astype(jnp.bfloat16), preferred_element_type=jnp.float32)
    h = jnp.maximum(h + b1, 0.0)
    ref_mix = jnp.dot(h.astype(jnp.bfloat16), w2.astype(jnp.bfloat16),
                      preferred_element_type=jnp.float32) + b2
    ref_mix = ref_mix.reshape(batch, seq, d_out)
    assert jnp.allclose(out, ref_mix, atol=2e-3, rtol=2e-3)

    print("KERNEL_OK")
</pallas_src>

<mosaic_0001>
module attributes {stable_mosaic.version = 11 : i64} {
  func.func @_ffn_kernel(%arg0: i32, %arg1: i32, %arg2: memref<16x32xbf16, #tpu.memory_space<vmem>>, %arg3: memref<32x64xbf16, #tpu.memory_space<vmem>>, %arg4: memref<1x64xf32, #tpu.memory_space<vmem>>, %arg5: memref<64x128xbf16, #tpu.memory_space<vmem>>, %arg6: memref<1x128xf32, #tpu.memory_space<vmem>>, %arg7: memref<16x128xf32, #tpu.memory_space<vmem>>, %arg8: memref<16x128xf32, #tpu.memory_space<vmem>>) attributes {dimension_semantics = [#tpu.dimension_semantics<parallel>, #tpu.dimension_semantics<arbitrary>], iteration_bounds = array<i64: 1, 1>, scalar_prefetch = 0 : i64, scratch_operands = 1 : i64, tpu.core_type = #tpu.core_type<tc>, window_params = [{transform_indices = @transform_0, window_bounds = array<i64: 16, 32>}, {transform_indices = @transform_1, window_bounds = array<i64: 32, 64>}, {transform_indices = @transform_2, window_bounds = array<i64: 1, 64>}, {transform_indices = @transform_3, window_bounds = array<i64: 64, 128>}, {pipeline_mode = #tpu.pipeline_mode<synchronous>, transform_indices = @transform_4, window_bounds = array<i64: 1, 128>}, {transform_indices = @transform_5, window_bounds = array<i64: 16, 128>}]} {
    %c0_i32 = arith.constant 0 : i32
    %0 = arith.cmpi eq, %arg1, %c0_i32 : i32
    %1 = arith.extui %0 : i1 to i32
    %c0_i32_0 = arith.constant 0 : i32
    %2 = arith.cmpi ne, %1, %c0_i32_0 : i32
    scf.if %2 {
      %cst_16 = arith.constant 0.000000e+00 : f32
      %20 = vector.broadcast %cst_16 : f32 to vector<16x128xf32>
      %c0_17 = arith.constant 0 : index
      %c0_18 = arith.constant 0 : index
      %21 = vector.load %arg8[%c0_17, %c0_18] : memref<16x128xf32, #tpu.memory_space<vmem>>, vector<16x128xf32>
      tpu.vector_store %arg8[%c0_17, %c0_18], %20 {strides = array<i32>} : memref<16x128xf32, #tpu.memory_space<vmem>>, vector<16x128xf32>,
    } else {
    }
    %c0 = arith.constant 0 : index
    %c0_1 = arith.constant 0 : index
    %3 = vector.load %arg2[%c0, %c0_1] : memref<16x32xbf16, #tpu.memory_space<vmem>>, vector<16x32xbf16>
    %c0_2 = arith.constant 0 : index
    %c0_3 = arith.constant 0 : index
    %4 = vector.load %arg3[%c0_2, %c0_3] : memref<32x64xbf16, #tpu.memory_space<vmem>>, vector<32x64xbf16>
    %cst = arith.constant dense<0.000000e+00> : vector<16x64xf32>
    %5 = tpu.matmul %3, %4, %cst {dimension_numbers = #tpu.dot_dimension_numbers<[1], [0], [0], [1], [0, 0, 1, 1], [], []>} : vector<16x32xbf16>, vector<32x64xbf16>, vector<16x64xf32> -> vector<16x64xf32>
    %c0_4 = arith.constant 0 : index
    %c0_5 = arith.constant 0 : index
    %6 = vector.load %arg4[%c0_4, %c0_5] : memref<1x64xf32, #tpu.memory_space<vmem>>, vector<1x64xf32>
    %7 = vector.broadcast %6 : vector<1x64xf32> to vector<16x64xf32>
    %8 = arith.addf %5, %7 : vector<16x64xf32>
    %cst_6 = arith.constant 0.000000e+00 : f32
    %9 = vector.broadcast %cst_6 : f32 to vector<16x64xf32>
    %10 = arith.maximumf %8, %9 : vector<16x64xf32>
    %c0_7 = arith.constant 0 : index
    %c0_8 = arith.constant 0 : index
    %11 = vector.load %arg8[%c0_7, %c0_8] : memref<16x128xf32, #tpu.memory_space<vmem>>, vector<16x128xf32>
    %12 = arith.truncf %10 : vector<16x64xf32> to vector<16x64xbf16>
    %c0_9 = arith.constant 0 : index
    %c0_10 = arith.constant 0 : index
    %13 = vector.load %arg5[%c0_9, %c0_10] : memref<64x128xbf16, #tpu.memory_space<vmem>>, vector<64x128xbf16>
    %cst_11 = arith.constant dense<0.000000e+00> : vector<16x128xf32>
    %14 = tpu.matmul %12, %13, %cst_11 {dimension_numbers = #tpu.dot_dimension_numbers<[1], [0], [0], [1], [0, 0, 1, 1], [], []>} : vector<16x64xbf16>, vector<64x128xbf16>, vector<16x128xf32> -> vector<16x128xf32>
    %15 = arith.addf %11, %14 : vector<16x128xf32>
    %c0_12 = arith.constant 0 : index
    %c0_13 = arith.constant 0 : index
    %16 = vector.load %arg8[%c0_12, %c0_13] : memref<16x128xf32, #tpu.memory_space<vmem>>, vector<16x128xf32>
    tpu.vector_store %arg8[%c0_12, %c0_13], %15 {strides = array<i32>} : memref<16x128xf32, #tpu.memory_space<vmem>>, vector<16x128xf32>,
    %c0_i32_14 = arith.constant 0 : i32
    %17 = arith.cmpi eq, %arg1, %c0_i32_14 : i32
    %18 = arith.extui %17 : i1 to i32
    %c0_i32_15 = arith.constant 0 : i32
    %19 = arith.cmpi ne, %18, %c0_i32_15 : i32
    scf.if %19 {
      %c0_16 = arith.constant 0 : index
      %c0_17 = arith.constant 0 : index
      %20 = vector.load %arg8[%c0_16, %c0_17] : memref<16x128xf32, #tpu.memory_space<vmem>>, vector<16x128xf32>
      %c0_18 = arith.constant 0 : index
      %c0_19 = arith.constant 0 : index
      %21 = vector.load %arg6[%c0_18, %c0_19] : memref<1x128xf32, #tpu.memory_space<vmem>>, vector<1x128xf32>
      %22 = vector.broadcast %21 : vector<1x128xf32> to vector<16x128xf32>
      %23 = arith.addf %20, %22 : vector<16x128xf32>
      %c0_20 = arith.constant 0 : index
      %c0_21 = arith.constant 0 : index
      %24 = vector.load %arg7[%c0_20, %c0_21] : memref<16x128xf32, #tpu.memory_space<vmem>>, vector<16x128xf32>
      tpu.vector_store %arg7[%c0_20, %c0_21], %23 {strides = array<i32>} : memref<16x128xf32, #tpu.memory_space<vmem>>, vector<16x128xf32>,
    } else {
    }
    return
  }
  func.func @transform_0(%arg0: i32, %arg1: i32) -> (i32, i32) {
    %c0_i32 = arith.constant 0 : i32
    %c0_i32_0 = arith.constant 0 : i32
    return %arg0, %c0_i32 : i32, i32
  }
  func.func @transform_1(%arg0: i32, %arg1: i32) -> (i32, i32) {
    %c0_i32 = arith.constant 0 : i32
    %c0_i32_0 = arith.constant 0 : i32
    return %c0_i32, %arg1 : i32, i32
  }
  func.func @transform_2(%arg0: i32, %arg1: i32) -> (i32, i32) {
    %c0_i32 = arith.constant 0 : i32
    %c0_i32_0 = arith.constant 0 : i32
    return %c0_i32, %arg1 : i32, i32
  }
  func.func @transform_3(%arg0: i32, %arg1: i32) -> (i32, i32) {
    %c0_i32 = arith.constant 0 : i32
    %c0_i32_0 = arith.constant 0 : i32
    return %arg1, %c0_i32 : i32, i32
  }
  func.func @transform_4(%arg0: i32, %arg1: i32) -> (i32, i32) {
    %c0_i32 = arith.constant 0 : i32
    %c0_i32_0 = arith.constant 0 : i32
    %c0_i32_1 = arith.constant 0 : i32
    return %c0_i32, %c0_i32_0 : i32, i32
  }
  func.func @transform_5(%arg0: i32, %arg1: i32) -> (i32, i32) {
    %c0_i32 = arith.constant 0 : i32
    %c0_i32_0 = arith.constant 0 : i32
    return %arg0, %c0_i32 : i32, i32
  }
}

</mosaic_0001>

<bundles_post_ra>
// kernel: position_wise_ffn.1
= control target key start
LH: loop header
LB: loop body
LE: loop exit
PB: predicated region body
PF: predicated region fallthrough
CT: control target
= control target key end

     0   :  { %v256_v0 = vmov 0.0   ;;  %vm257_vm0 = vmmov 0   ;;  %vm57_vm1 = vcmask 261120   ;;  %vm139_vm2 = vcmask 523264   ;;  %s321_s1 = inlined_call_operand.vmem [shape: bf16[32,64], index: 1, kind: input, shape index: {}]   ;;  %s322_s3 = inlined_call_operand.vmem [shape: bf16[64,128], index: 3, kind: input, shape index: {}]   ;;  %s323_s0 = inlined_call_operand.vmem [shape: bf16[16,32], index: 0, kind: input, shape index: {}]   ;;  %s324_s2 = inlined_call_operand.vmem [shape: f32[1,64], index: 2, kind: input, shape index: {}]   ;;  %s325_s4 = inlined_call_operand.vmem [shape: f32[1,128], index: 4, kind: input, shape index: {}]   ;;  %s326_s5 = inlined_call_operand.vmem [shape: f32[16,128], index: 5, kind: output, shape index: {}]  }
   0x1   :  { %227 = vmatprep.subr.bf16.mxu0 %v256_v0  ;;  %v249_v1 = vld [vmem:[%s321_s1 + $0x8] sm:$0xff]   ;;  %231 = vmatprep.mubr.msk.bf16.mxu0 %vm257_vm0, %v256_v0  ;;  %v250_v2 = vld [vmem:[%s321_s1] sm:$0xff]   ;;  %v252_v3 = vld [vmem:[%s322_s3 + $0x18] sm:$0xff]  }
   0x2   :  { %235 = vmatprep.subr.bf16.mxu1 %v256_v0  ;;  %243 = vmatprep.mubr.msk.bf16.mxu1 %vm257_vm0, %v256_v0  ;;  %v251_v4 = vld [vmem:[%s323_s0] sm:$0xff]   ;;  %v253_v5 = vld [vmem:[%s322_s3 + $0x10] sm:$0xff]   ;;  %v254_v6 = vld [vmem:[%s322_s3 + $0x8] sm:$0xff]  }
   0x3   :  { %228 = vmatpush3.bf16.msra.mxu0 %v249_v1  ;;  %236 = vmatpush3.bf16.msra.mxu1 %v252_v3  ;;  %v255_v7 = vld [vmem:[%s322_s3] sm:$0xff]  }
   0x4   :  { %229 = vmatprep.subr.bf16.mxu0 %v256_v0  ;;  %237 = vmatprep.subr.bf16.mxu1 %v256_v0  ;;  %v208_v8 = vld [vmem:[%s324_s2] ss:$0 sm:$0xff] }
   0x5   :  { %v218_v18 = vld [vmem:[%s325_s4] ss:$0 sm:$0xff] }
   0x7   :  { %230 = vmatpush3.bf16.msra.mxu0 %v250_v2  ;;  %238 = vmatpush3.bf16.msra.mxu1 %v253_v5 }
   0x8   :  { %239 = vmatprep.subr.bf16.mxu1 %v256_v0 }
   0xa   :  { %232 = vmatmul.mubr.msk.bf16.vlgmr.msra.gmra.mxu0 %vm57_vm1, %v251_v4 }
   0xb   :  { %240 = vmatpush3.bf16.msra.mxu1 %v254_v6 }
   0xc   :  { %241 = vmatprep.subr.bf16.mxu1 %v256_v0 }
   0xf   :  { %242 = vmatpush3.bf16.msra.mxu1 %v255_v7 }
  0xca   :  { %v95_v9 = vpop.f32.mrf.mxu0 }
  0xcb   :  { %v96_v11 = vadd.f32 %v208_v8, %v95_v9 }
  0xcc   :  { %v233_v10 = vpop.f32.mrf.mxu0 }
  0xcd   :  { %v102_v15 = vmax.f32 %v96_v11, 0.0 }
  0xce   :  { %v98_v12 = vpop.f32.mrf.mxu0 }
  0xcf   :  { %v99_v13 = vadd.f32 %v208_v8, %v98_v12 }
  0xd0   :  { %v234_v14 = vpop.f32.mrf.mxu0 }
  0xd1   :  { %v103_v16 = vmax.f32 %v99_v13, 0.0 }
  0xd3   :  { %v106_v17 = vpack.c.bf16 %v103_v16, %v102_v15 }
  0xd5   :  { %244 = vmatmul.mubr.msk.bf16.vlgmr.msra.gmra.mxu1 %vm139_vm2, %v106_v17 }
 0x195   :  { %v177_v19 = vpop.f32.mrf.mxu1 }
 0x196   :  { %v200_v20 = vadd.f32 %v218_v18, %v177_v19 }
 0x197   :  { %v245_v21 = vpop.f32.mrf.mxu1 }
 0x198   :  { %202 = vst [vmem:[%s326_s5] sm:$0xff] %v200_v20 }
 0x199   :  { %v180_v22 = vpop.f32.mrf.mxu1 }
 0x19a   :  { %v201_v23 = vadd.f32 %v218_v18, %v180_v22 }
 0x19b   :  { %v246_v24 = vpop.f32.mrf.mxu1 }
 0x19c   :  { %203 = vst [vmem:[%s326_s5 + $0x8] sm:$0xff] %v201_v23 }

</bundles_post_ra>
